<compile_context>
chip_gen: v7x
topology: tpu7x:2x2x1
jax: 0.10.0
libtpu: 0.0.40
codegen_flags: <defaults>
</compile_context>

<pallas_src>
import jax
import jax.numpy as jnp
from jax.experimental import pallas as pl
from jax.experimental.pallas import tpu as pltpu


def _round_up(x: int, m: int) -> int:
    return ((x + m - 1) // m) * m


def _vmem_budget_bytes() -> int:
    """Generation-aware VMEM budget (v5e/v6e: 128 MiB physical, v7x: 64 MiB)."""
    try:
        cap = int(pltpu.get_tpu_info().vmem_capacity_bytes)
        if cap > 0:
            return min(int(cap * 0.8), 100 << 20)
    except Exception:
        pass
    return 48 << 20  # conservative default that fits every generation


def _pad_cast(a, pads, dtype):
    """Pad (only if needed) and cast in one XLA pass."""
    if any(hi for _, hi in pads):
        a = jnp.pad(a, pads)
    if a.dtype != dtype:
        a = a.astype(dtype)
    return a


def _choose_plan(B, K, N, mm_bytes, out_bytes, budget):
    """Pick (TM, TN, TK, Kp, Np, k_tiled) for the tile plan."""
    Kp = _round_up(K, 128)
    Np = _round_up(N, 128)
    # sublane multiple of the matmul dtype (bf16 packs 2 rows / sublane pair)
    sub = 16 if mm_bytes == 2 else (32 if mm_bytes == 1 else 8)
    TM = min(_round_up(B, sub), 512)

    cap = int(0.6 * budget)          # leave pipelining / compiler headroom
    bias_bytes = 2 * Np * 4

    # TN candidates that divide Np (Np is a 128-multiple) -> no tile padding.
    cands = sorted({c for c in (Np, 4096, 2048, 1024, 512, 384, 256, 128)
                    if 0 < c <= Np and Np % c == 0}, reverse=True)

    def fits_untiled_k(tm, tn):
        w = tn * Kp * mm_bytes            # weight: single-buffered, resident
        x = 2 * tm * Kp * mm_bytes        # x: double-buffered stream
        o = 2 * tm * tn * out_bytes       # out: double-buffered stream
        return (w + x + o + bias_bytes) <= cap

    TN = None
    for c in cands:                        # prefer TN == Np: x read only once
        if fits_untiled_k(TM, c):
            TN = c
            break

    k_tiled = TN is None
    if k_tiled:
        TN = max(c for c in cands if c <= 512)

    # v7x megacore: prefer >=2 tiles along a parallel axis when batch allows.
    if Np // TN == 1 and _round_up(B, TM) // TM == 1:
        tm_half = _round_up(max(1, (B + 1) // 2), sub)
        if tm_half < TM:
            TM = tm_half

    TK = Kp
    if k_tiled:
        while TK > 128:
            need = (2 * (TM + TN) * TK * mm_bytes   # x + W double-buffered
                    + TM * TN * 4                    # f32 accumulator scratch
                    + 2 * TM * TN * out_bytes + bias_bytes)
            if need <= cap:
                break
            TK = _round_up(TK // 2, 128)
        Kp = _round_up(Kp, TK)

    return TM, TN, TK, Kp, Np, k_tiled


# ----------------------------------------------------------------------------
# Kernels
# ----------------------------------------------------------------------------
def _mlp_kernel(x_ref, w_ref, b_ref, o_ref):
    # x: [TM, Kp]   w: [TN, Kp] (PyTorch [out, in])   b: [1, TN]   o: [TM, TN]
    acc = jax.lax.dot_general(
        x_ref[...], w_ref[...],
        dimension_numbers=(((1,), (1,)), ((), ())),   # contract both last dims
        preferred_element_type=jnp.float32)
    acc = acc + b_ref[...].astype(jnp.float32)
    o_ref[...] = jnp.tanh(acc).astype(o_ref.dtype)


def _mlp_kernel_ktiled(x_ref, w_ref, b_ref, o_ref, acc_ref):
    # Same as above but with K streamed over grid axis 2 ("arbitrary").
    k = pl.program_id(2)

    @pl.when(k == 0)
    def _init():
        acc_ref[...] = jnp.zeros_like(acc_ref)

    acc_ref[...] += jax.lax.dot_general(
        x_ref[...], w_ref[...],
        dimension_numbers=(((1,), (1,)), ((), ())),
        preferred_element_type=jnp.float32)

    @pl.when(k == pl.num_programs(2) - 1)
    def _finalize():
        acc = acc_ref[...] + b_ref[...].astype(jnp.float32)
        o_ref[...] = jnp.tanh(acc).astype(o_ref.dtype)


# ----------------------------------------------------------------------------
# Wrapper
# ----------------------------------------------------------------------------
def mlp_layer(features, weight, bias, *, matmul_dtype=jnp.bfloat16,
              force_pallas=False):
    """tanh(features @ weight.T + bias).

    features: [..., H_in]; weight: [H_out, H_in] (nn.Linear layout); bias: [H_out].
    matmul_dtype: MXU operand dtype (default bf16; accumulation stays f32).
    """
    orig_shape = features.shape
    K = orig_shape[-1]
    N = weight.shape[0]
    assert weight.shape == (N, K) and bias.shape == (N,)

    out_dtype = features.dtype
    x2d = features.reshape(-1, K)
    B = x2d.shape[0]

    # Tiny-shape fallback: fused XLA dot beats pallas_call fixed cost + 128-lane
    # padding waste for sub-MFLOP problems.
    if not force_pallas and 2 * B * K * N < (1 << 21):
        y = jnp.tanh(jnp.dot(x2d, weight.T, preferred_element_type=jnp.float32)
                     + bias.astype(jnp.float32)).astype(out_dtype)
        return y.reshape(*orig_shape[:-1], N)

    mm_dtype = (jnp.dtype(matmul_dtype) if matmul_dtype is not None
                else jnp.dtype(features.dtype))
    mm_bytes = mm_dtype.itemsize
    out_bytes = jnp.dtype(out_dtype).itemsize

    budget = _vmem_budget_bytes()
    TM, TN, TK, Kp, Np, k_tiled = _choose_plan(B, K, N, mm_bytes, out_bytes, budget)
    Bp = _round_up(B, TM)

    xp = _pad_cast(x2d, ((0, Bp - B), (0, Kp - K)), mm_dtype)
    wp = _pad_cast(weight, ((0, Np - N), (0, Kp - K)), mm_dtype)
    bp = _pad_cast(bias, ((0, Np - N),), jnp.float32).reshape(1, Np)

    cost = pl.CostEstimate(
        flops=2 * Bp * Np * Kp,
        transcendentals=Bp * Np,
        bytes_accessed=(Bp * Kp + Np * Kp) * mm_bytes + Np * 4 + Bp * Np * out_bytes)

    def _run(single_buffer_w: bool):
        if not k_tiled:
            w_kwargs = {"pipeline_mode": pl.Buffered(1)} if single_buffer_w else {}
            grid = (Np // TN, Bp // TM)
            in_specs = [
                pl.BlockSpec((TM, Kp), lambda j, i: (i, 0)),   # x streams over i
                pl.BlockSpec((TN, Kp), lambda j, i: (j, 0),    # W resident per j
                             **w_kwargs),
                pl.BlockSpec((1, TN), lambda j, i: (0, j)),    # bias tile
            ]
            out_specs = pl.BlockSpec((TM, TN), lambda j, i: (i, j))
            scratch = []
            kernel = _mlp_kernel
            dims = ("parallel", "parallel")
        else:
            grid = (Np // TN, Bp // TM, Kp // TK)
            in_specs = [
                pl.BlockSpec((TM, TK), lambda j, i, k: (i, k)),
                pl.BlockSpec((TN, TK), lambda j, i, k: (j, k)),
                pl.BlockSpec((1, TN), lambda j, i, k: (0, j)),
            ]
            out_specs = pl.BlockSpec((TM, TN), lambda j, i, k: (i, j))
            scratch = [pltpu.VMEM((TM, TN), jnp.float32)]
            kernel = _mlp_kernel_ktiled
            dims = ("parallel", "parallel", "arbitrary")

        return pl.pallas_call(
            kernel,
            out_shape=jax.ShapeDtypeStruct((Bp, Np), out_dtype),
            grid_spec=pltpu.PrefetchScalarGridSpec(
                num_scalar_prefetch=0,
                grid=grid,
                in_specs=in_specs,
                out_specs=out_specs,
                scratch_shapes=scratch),
            compiler_params=pltpu.CompilerParams(
                dimension_semantics=dims,
                vmem_limit_bytes=int(budget)),
            cost_estimate=cost,
        )(xp, wp, bp)

    if k_tiled:
        out = _run(False)
    else:
        try:
            out = _run(True)       # single-buffered resident weight (saves VMEM)
        except Exception:
            out = _run(False)      # robust fallback: default double buffering

    out = out[:B, :N]
    return out.reshape(*orig_shape[:-1], N)


if __name__ == "__main__":
    key = jax.random.PRNGKey(0)
    k_x, k_w, k_b = jax.random.split(key, 3)

    batch, hidden = 8, 32  # small shapes consistent with config.hidden_size
    features = jax.random.normal(k_x, (batch, hidden), dtype=jnp.float32)
    bound = 1.0 / (hidden ** 0.5)  # nn.Linear-style init
    weight = jax.random.uniform(k_w, (hidden, hidden), jnp.float32, -bound, bound)
    bias = jax.random.uniform(k_b, (hidden,), jnp.float32, -bound, bound)

    ref = jnp.tanh(features @ weight.T + bias)

    # Pallas path, default bf16 MXU operands (f32 accumulate / bias / tanh).
    out_bf16 = mlp_layer(features, weight, bias, force_pallas=True)
    jax.block_until_ready(out_bf16)
    assert out_bf16.shape == features.shape
    assert jnp.allclose(out_bf16, ref, atol=2e-2, rtol=2e-2)

    # Pallas path, f32 MXU operands (tight tolerance).
    out_f32 = mlp_layer(features, weight, bias, matmul_dtype=jnp.float32,
                        force_pallas=True)
    jax.block_until_ready(out_f32)
    assert jnp.allclose(out_f32, ref, atol=1e-4, rtol=1e-4)

    # Tiny-shape XLA fallback path (default behaviour for this demo size).
    out_fb = mlp_layer(features, weight, bias)
    jax.block_until_ready(out_fb)
    assert jnp.allclose(out_fb, ref, atol=1e-5, rtol=1e-5)

    print("KERNEL_OK")
</pallas_src>

<mosaic_0001>
module attributes {stable_mosaic.version = 11 : i64} {
  func.func @_mlp_kernel(%arg0: i32, %arg1: i32, %arg2: memref<16x128xbf16, #tpu.memory_space<vmem>>, %arg3: memref<128x128xbf16, #tpu.memory_space<vmem>>, %arg4: memref<1x128xf32, #tpu.memory_space<vmem>>, %arg5: memref<16x128xf32, #tpu.memory_space<vmem>>) attributes {dimension_semantics = [#tpu.dimension_semantics<parallel>, #tpu.dimension_semantics<parallel>], iteration_bounds = array<i64: 1, 1>, scalar_prefetch = 0 : i64, scratch_operands = 0 : i64, tpu.core_type = #tpu.core_type<tc>, window_params = [{transform_indices = @transform_0, window_bounds = array<i64: 16, 128>}, {pipeline_mode = #tpu.pipeline_mode<synchronous>, transform_indices = @transform_1, window_bounds = array<i64: 128, 128>}, {transform_indices = @transform_2, window_bounds = array<i64: 1, 128>}, {transform_indices = @transform_3, window_bounds = array<i64: 16, 128>}]} {
    %c0 = arith.constant 0 : index
    %c0_0 = arith.constant 0 : index
    %0 = vector.load %arg2[%c0, %c0_0] : memref<16x128xbf16, #tpu.memory_space<vmem>>, vector<16x128xbf16>
    %c0_1 = arith.constant 0 : index
    %c0_2 = arith.constant 0 : index
    %1 = vector.load %arg3[%c0_1, %c0_2] : memref<128x128xbf16, #tpu.memory_space<vmem>>, vector<128x128xbf16>
    %cst = arith.constant dense<0.000000e+00> : vector<16x128xf32>
    %2 = tpu.matmul %0, %1, %cst {dimension_numbers = #tpu.dot_dimension_numbers<[1], [1], [0], [0], [0, 0, 1, 0], [], []>} : vector<16x128xbf16>, vector<128x128xbf16>, vector<16x128xf32> -> vector<16x128xf32>
    %c0_3 = arith.constant 0 : index
    %c0_4 = arith.constant 0 : index
    %3 = vector.load %arg4[%c0_3, %c0_4] : memref<1x128xf32, #tpu.memory_space<vmem>>, vector<1x128xf32>
    %4 = vector.broadcast %3 : vector<1x128xf32> to vector<16x128xf32>
    %5 = arith.addf %2, %4 : vector<16x128xf32>
    %6 = math.tanh %5 : vector<16x128xf32>
    %c0_5 = arith.constant 0 : index
    %c0_6 = arith.constant 0 : index
    %7 = vector.load %arg5[%c0_5, %c0_6] : memref<16x128xf32, #tpu.memory_space<vmem>>, vector<16x128xf32>
    tpu.vector_store %arg5[%c0_5, %c0_6], %6 {strides = array<i32>} : memref<16x128xf32, #tpu.memory_space<vmem>>, vector<16x128xf32>,
    return
  }
  func.func @transform_0(%arg0: i32, %arg1: i32) -> (i32, i32) {
    %c0_i32 = arith.constant 0 : i32
    %c0_i32_0 = arith.constant 0 : i32
    return %arg1, %c0_i32 : i32, i32
  }
  func.func @transform_1(%arg0: i32, %arg1: i32) -> (i32, i32) {
    %c0_i32 = arith.constant 0 : i32
    %c0_i32_0 = arith.constant 0 : i32
    return %arg0, %c0_i32 : i32, i32
  }
  func.func @transform_2(%arg0: i32, %arg1: i32) -> (i32, i32) {
    %c0_i32 = arith.constant 0 : i32
    %c0_i32_0 = arith.constant 0 : i32
    return %c0_i32, %arg0 : i32, i32
  }
  func.func @transform_3(%arg0: i32, %arg1: i32) -> (i32, i32) {
    %c0_i32 = arith.constant 0 : i32
    return %arg1, %arg0 : i32, i32
  }
}

module attributes {stable_mosaic.version = 11 : i64} {
  func.func @_mlp_kernel(%arg0: i32, %arg1: i32, %arg2: memref<16x128xbf16, #tpu.memory_space<vmem>>, %arg3: memref<128x128xbf16, #tpu.memory_space<vmem>>, %arg4: memref<1x128xf32, #tpu.memory_space<vmem>>, %arg5: memref<16x128xf32, #tpu.memory_space<vmem>>) attributes {dimension_semantics = [#tpu.dimension_semantics<parallel>, #tpu.dimension_semantics<parallel>], iteration_bounds = array<i64: 1, 1>, scalar_prefetch = 0 : i64, scratch_operands = 0 : i64, tpu.core_type = #tpu.core_type<tc>, window_params = [{transform_indices = @transform_0, window_bounds = array<i64: 16, 128>}, {transform_indices = @transform_1, window_bounds = array<i64: 128, 128>}, {transform_indices = @transform_2, window_bounds = array<i64: 1, 128>}, {transform_indices = @transform_3, window_bounds = array<i64: 16, 128>}]} {
    %c0 = arith.constant 0 : index
    %c0_0 = arith.constant 0 : index
    %0 = vector.load %arg2[%c0, %c0_0] : memref<16x128xbf16, #tpu.memory_space<vmem>>, vector<16x128xbf16>
    %c0_1 = arith.constant 0 : index
    %c0_2 = arith.constant 0 : index
    %1 = vector.load %arg3[%c0_1, %c0_2] : memref<128x128xbf16, #tpu.memory_space<vmem>>, vector<128x128xbf16>
    %cst = arith.constant dense<0.000000e+00> : vector<16x128xf32>
    %2 = tpu.matmul %0, %1, %cst {dimension_numbers = #tpu.dot_dimension_numbers<[1], [1], [0], [0], [0, 0, 1, 0], [], []>} : vector<16x128xbf16>, vector<128x128xbf16>, vector<16x128xf32> -> vector<16x128xf32>
    %c0_3 = arith.constant 0 : index
    %c0_4 = arith.constant 0 : index
    %3 = vector.load %arg4[%c0_3, %c0_4] : memref<1x128xf32, #tpu.memory_space<vmem>>, vector<1x128xf32>
    %4 = vector.broadcast %3 : vector<1x128xf32> to vector<16x128xf32>
    %5 = arith.addf %2, %4 : vector<16x128xf32>
    %6 = math.tanh %5 : vector<16x128xf32>
    %c0_5 = arith.constant 0 : index
    %c0_6 = arith.constant 0 : index
    %7 = vector.load %arg5[%c0_5, %c0_6] : memref<16x128xf32, #tpu.memory_space<vmem>>, vector<16x128xf32>
    tpu.vector_store %arg5[%c0_5, %c0_6], %6 {strides = array<i32>} : memref<16x128xf32, #tpu.memory_space<vmem>>, vector<16x128xf32>,
    return
  }
  func.func @transform_0(%arg0: i32, %arg1: i32) -> (i32, i32) {
    %c0_i32 = arith.constant 0 : i32
    %c0_i32_0 = arith.constant 0 : i32
    return %arg1, %c0_i32 : i32, i32
  }
  func.func @transform_1(%arg0: i32, %arg1: i32) -> (i32, i32) {
    %c0_i32 = arith.constant 0 : i32
    %c0_i32_0 = arith.constant 0 : i32
    return %arg0, %c0_i32 : i32, i32
  }
  func.func @transform_2(%arg0: i32, %arg1: i32) -> (i32, i32) {
    %c0_i32 = arith.constant 0 : i32
    %c0_i32_0 = arith.constant 0 : i32
    return %c0_i32, %arg0 : i32, i32
  }
  func.func @transform_3(%arg0: i32, %arg1: i32) -> (i32, i32) {
    %c0_i32 = arith.constant 0 : i32
    return %arg1, %arg0 : i32, i32
  }
}

</mosaic_0001>

<bundles_post_ra>
// kernel: tpu_custom_call.1
= control target key start
LH: loop header
LB: loop body
LE: loop exit
PB: predicated region body
PF: predicated region fallthrough
CT: control target
= control target key end

     0   :  { %8 = vsyncpa [#allocation3], 0  ;;  %s387_s0 = inlined_call_operand.hbm [shape: bf16[16,128], index: 0, kind: input, shape index: {}]   ;;  %s388_s1 = inlined_call_operand.hbm [shape: bf16[128,128], index: 1, kind: input, shape index: {}]   ;;  %s389_s2 = inlined_call_operand.vmem [shape: f32[1,128], index: 2, kind: input, shape index: {}]   ;;  %s390_s3 = inlined_call_operand.hbm [shape: f32[16,128], index: 3, kind: output, shape index: {}]  }
   0x1   :  { %9 = vsyncpa [#allocation6], 0 }
   0x2   :  { %10 = vsyncpa [#allocation4], 0  ;;  %s319_s12 = smov [#allocation2]   ;;  %s247_s16 = scalar_lea.hbm %s387_s0, 128 }
   0x3   :  { %s16_s13 = sshll.u32 %s319_s12, 4  ;;  %p248_p0 = scmp.ne.s32.totalorder %s387_s0, %s247_s16  ;;  %s17_s13 = int_to_ptr.vmem [resolvable:$true] %s16_s13 }
   0x4   :  { %p251_p1 = scmp.lt.u32.totalorder %s247_s16, %s387_s0 }
   0x6   :  { %p253_p2 = pnand %p251_p1, %p248_p0 }
   0x8   :  { %256 = shalt.err (!%p253_p2)
}
   0x9   :  { %s257_s21 = scalar_lea.vmem %s17_s13, 128  ;;  %p262_p4 = scmp.lt.s32.totalorder %s17_s13, %s17_s13 }
   0xa   :  { %p258_p3 = scmp.ne.s32.totalorder %s17_s13, %s257_s21  ;;  %p263_p5 = scmp.lt.s32.totalorder %s257_s21, %s257_s21 }
   0xc   :  { %p264_p6 = por %p263_p5, %p262_p4 }
   0xe   :  { %p265_p7 = pnand %p264_p6, %p258_p3 }
  0x10   :  { %268 = shalt.err (!%p265_p7)
}
  0x11   :  { %s320_s22 = smov 64   ;;  %s321_s23 = smov 4  }
  0x12   :  { %22 = dma.hbm_to_vmem [thread:$0]  %s387_s0, 128, %s17_s13, [#allocation3], %s320_s22, %s320_s22, %s321_s23  }
  0x13   :  { %s322_s26 = smov [#allocation5]   ;;  %s269_s30 = scalar_lea.hbm %s388_s1, 1024 }
  0x14   :  { %s28_s27 = sshll.u32 %s322_s26, 4  ;;  %p270_p8 = scmp.ne.s32.totalorder %s388_s1, %s269_s30  ;;  %s29_s27 = int_to_ptr.vmem [resolvable:$true] %s28_s27 }
  0x15   :  { %p273_p9 = scmp.lt.u32.totalorder %s269_s30, %s388_s1 }
  0x17   :  { %p275_p10 = pnand %p273_p9, %p270_p8 }
  0x19   :  { %278 = shalt.err (!%p275_p10)
}
  0x1a   :  { %s279_s8 = scalar_lea.vmem %s29_s27, 1024  ;;  %p284_p12 = scmp.lt.s32.totalorder %s29_s27, %s29_s27 }
  0x1b   :  { %p280_p11 = scmp.ne.s32.totalorder %s29_s27, %s279_s8  ;;  %p285_p13 = scmp.lt.s32.totalorder %s279_s8, %s279_s8 }
  0x1d   :  { %p286_p0 = por %p285_p13, %p284_p12 }
  0x1f   :  { %p287_p1 = pnand %p286_p0, %p280_p11 }
  0x21   :  { %290 = shalt.err (!%p287_p1)
}
  0x22   :  { %34 = dma.hbm_to_vmem [thread:$0]  %s388_s1, 1024, %s29_s27, [#allocation6], %s320_s22, %s320_s22, %s321_s23  }
  0x23   :  { %313 = dma.done.wait [#allocation3], 128  }
  0x24   :  { %314 = vsyncadd [#allocation3], 4294967168 }
  0x25   :  { %315 = dma.done.wait [#allocation6], 1024  }
  0x26   :  { %316 = vsyncadd [#allocation6], 4294966272  ;;  %v323_v0 = vmov 0.0   ;;  %vm324_vm0 = vmmov 0   ;;  %v234_v1 = vld [vmem:[#allocation5] sm:$0xff]   ;;  %v235_v2 = vld [vmem:[#allocation5 + $0x8] sm:$0xff]  }
  0x27   :  { %205 = vmatprep.subr.bf16.mxu0 %v323_v0  ;;  %221 = vmatprep.mubr.msk.bf16.mxu0 %vm324_vm0, %v323_v0  ;;  %v236_v3 = vld [vmem:[#allocation5 + $0x10] sm:$0xff]   ;;  %v237_v4 = vld [vmem:[#allocation5 + $0x18] sm:$0xff]   ;;  %v238_v5 = vld [vmem:[#allocation5 + $0x20] sm:$0xff]   ;;  %s325_s11 = smov [#allocation7]  }
  0x28   :  { %206 = vmatpush3.bf16.xpose.msra.mxu0 %v234_v1  ;;  %v239_v6 = vld [vmem:[#allocation5 + $0x28] sm:$0xff]   ;;  %v240_v7 = vld [vmem:[#allocation5 + $0x30] sm:$0xff]   ;;  %v241_v8 = vld [vmem:[#allocation5 + $0x38] sm:$0xff]   ;;  %s173_s12 = sshll.u32 %s325_s11, 4  ;;  %s174_s12 = int_to_ptr.vmem [resolvable:$true] %s173_s12 }
  0x29   :  { %207 = vmatprep.subr.bf16.mxu0 %v323_v0  ;;  %v242_v9 = vld [vmem:[#allocation2] sm:$0xff]   ;;  %s291_s13 = scalar_lea.vmem %s174_s12, 256  ;;  %p296_p3 = scmp.lt.s32.totalorder %s174_s12, %s174_s12 }
  0x2a   :  { %v186_v10 = vld [vmem:[%s389_s2] ss:$0 sm:$0xff]  ;;  %p292_p2 = scmp.ne.s32.totalorder %s174_s12, %s291_s13  ;;  %p297_p4 = scmp.lt.s32.totalorder %s291_s13, %s291_s13 }
  0x2c   :  { %p298_p5 = por %p297_p4, %p296_p3 }
  0x2e   :  { %p299_p6 = pnand %p298_p5, %p292_p2 }
  0x30   :  { %208 = vmatpush3.bf16.xpose.msra.mxu0 %v235_v2 }
  0x31   :  { %209 = vmatprep.subr.bf16.mxu0 %v323_v0 }
  0x38   :  { %210 = vmatpush3.bf16.xpose.msra.mxu0 %v236_v3 }
  0x39   :  { %211 = vmatprep.subr.bf16.mxu0 %v323_v0 }
  0x40   :  { %212 = vmatpush3.bf16.xpose.msra.mxu0 %v237_v4 }
  0x41   :  { %213 = vmatprep.subr.bf16.mxu0 %v323_v0 }
  0x48   :  { %214 = vmatpush3.bf16.xpose.msra.mxu0 %v238_v5 }
  0x49   :  { %215 = vmatprep.subr.bf16.mxu0 %v323_v0 }
  0x50   :  { %216 = vmatpush3.bf16.xpose.msra.mxu0 %v239_v6 }
  0x51   :  { %217 = vmatprep.subr.bf16.mxu0 %v323_v0 }
  0x58   :  { %218 = vmatpush3.bf16.xpose.msra.mxu0 %v240_v7 }
  0x59   :  { %219 = vmatprep.subr.bf16.mxu0 %v323_v0 }
  0x60   :  { %220 = vmatpush3.bf16.xpose.msra.mxu0 %v241_v8 }
  0x67   :  { %222 = vmatmul.mubr.bf16.vlgmr.msra.gmra.mrb[0].mxu0 %v242_v9 }
 0x13a   :  { %v157_v11 = vpop.f32.mrb[0].mxu0 }
 0x13b   :  { %v158_v12 = vadd.f32 %v186_v10, %v157_v11  ;;  %v223_v13 = vpop.f32.mrb[1].mxu0 }
 0x13c   :  { %v160_v14 = vpop.f32.mrb[2].mxu0 }
 0x13d   :  { %243 = vtanh.f32 %v158_v12  ;;  %v161_v15 = vadd.f32 %v186_v10, %v160_v14  ;;  %v224_v16 = vpop.f32.mrb[3].mxu0 }
 0x13f   :  { %245 = vtanh.f32 %v161_v15 }
 0x147   :  { %v244_v17 = vpop.eup %243 }
 0x148   :  { %166 = vst [vmem:[#allocation7] sm:$0xff] %v244_v17 }
 0x149   :  { %v246_v18 = vpop.eup %245 }
 0x14a   :  { %167 = vst [vmem:[#allocation7 + $0x8] sm:$0xff] %v246_v18 }
 0x14b   :  { %302 = shalt.err (!%p299_p6)
}
 0x14c   :  { %s303_s15 = scalar_lea.hbm %s390_s3, 256 }
 0x14d   :  { %p304_p7 = scmp.ne.s32.totalorder %s390_s3, %s303_s15  ;;  %p307_p8 = scmp.lt.u32.totalorder %s303_s15, %s390_s3 }
 0x14f   :  { %p309_p9 = pnand %p307_p8, %p304_p7 }
 0x151   :  { %312 = shalt.err (!%p309_p9)
}
 0x152   :  { %s326_s20 = smov 128   ;;  %s327_s21 = smov 8  }
 0x153   :  { %179 = dma.vmem_to_hbm [thread:$0]  %s174_s12, 256, %s390_s3, [#allocation4], %s326_s20, %s326_s20, %s327_s21  }
 0x154   :  { %317 = dma.done.wait [#allocation4], 256  }
 0x155   :  { %318 = vsyncadd [#allocation4], 4294967040 }
 0x156   :  { %183 = vsyncpa [#allocation3], 1 }
 0x157   :  { %184 = vsyncpa [#allocation6], 1 }
 0x158   :  { %185 = vsyncpa [#allocation4], 1 }

// kernel: tpu_custom_call.1
= control target key start
LH: loop header
LB: loop body
LE: loop exit
PB: predicated region body
PF: predicated region fallthrough
CT: control target
= control target key end

     0   :  { %8 = vsyncpa [#allocation3], 0  ;;  %s387_s0 = inlined_call_operand.hbm [shape: bf16[16,128], index: 0, kind: input, shape index: {}]   ;;  %s388_s1 = inlined_call_operand.hbm [shape: bf16[128,128], index: 1, kind: input, shape index: {}]   ;;  %s389_s2 = inlined_call_operand.vmem [shape: f32[1,128], index: 2, kind: input, shape index: {}]   ;;  %s390_s3 = inlined_call_operand.hbm [shape: f32[16,128], index: 3, kind: output, shape index: {}]  }
   0x1   :  { %9 = vsyncpa [#allocation6], 0 }
   0x2   :  { %10 = vsyncpa [#allocation4], 0  ;;  %s319_s12 = smov [#allocation2]   ;;  %s247_s16 = scalar_lea.hbm %s387_s0, 128 }
   0x3   :  { %s16_s13 = sshll.u32 %s319_s12, 4  ;;  %p248_p0 = scmp.ne.s32.totalorder %s387_s0, %s247_s16  ;;  %s17_s13 = int_to_ptr.vmem [resolvable:$true] %s16_s13 }
   0x4   :  { %p251_p1 = scmp.lt.u32.totalorder %s247_s16, %s387_s0 }
   0x6   :  { %p253_p2 = pnand %p251_p1, %p248_p0 }
   0x8   :  { %256 = shalt.err (!%p253_p2)
}
   0x9   :  { %s257_s21 = scalar_lea.vmem %s17_s13, 128  ;;  %p262_p4 = scmp.lt.s32.totalorder %s17_s13, %s17_s13 }
   0xa   :  { %p258_p3 = scmp.ne.s32.totalorder %s17_s13, %s257_s21  ;;  %p263_p5 = scmp.lt.s32.totalorder %s257_s21, %s257_s21 }
   0xc   :  { %p264_p6 = por %p263_p5, %p262_p4 }
   0xe   :  { %p265_p7 = pnand %p264_p6, %p258_p3 }
  0x10   :  { %268 = shalt.err (!%p265_p7)
}
  0x11   :  { %s320_s22 = smov 64   ;;  %s321_s23 = smov 4  }
  0x12   :  { %22 = dma.hbm_to_vmem [thread:$0]  %s387_s0, 128, %s17_s13, [#allocation3], %s320_s22, %s320_s22, %s321_s23  }
  0x13   :  { %s322_s26 = smov [#allocation5]   ;;  %s269_s30 = scalar_lea.hbm %s388_s1, 1024 }
  0x14   :  { %s28_s27 = sshll.u32 %s322_s26, 4  ;;  %p270_p8 = scmp.ne.s32.totalorder %s388_s1, %s269_s30  ;;  %s29_s27 = int_to_ptr.vmem [resolvable:$true] %s28_s27 }
  0x15   :  { %p273_p9 = scmp.lt.u32.totalorder %s269_s30, %s388_s1 }
  0x17   :  { %p275_p10 = pnand %p273_p9, %p270_p8 }
  0x19   :  { %278 = shalt.err (!%p275_p10)
}
  0x1a   :  { %s279_s8 = scalar_lea.vmem %s29_s27, 1024  ;;  %p284_p12 = scmp.lt.s32.totalorder %s29_s27, %s29_s27 }
  0x1b   :  { %p280_p11 = scmp.ne.s32.totalorder %s29_s27, %s279_s8  ;;  %p285_p13 = scmp.lt.s32.totalorder %s279_s8, %s279_s8 }
  0x1d   :  { %p286_p0 = por %p285_p13, %p284_p12 }
  0x1f   :  { %p287_p1 = pnand %p286_p0, %p280_p11 }
  0x21   :  { %290 = shalt.err (!%p287_p1)
}
  0x22   :  { %34 = dma.hbm_to_vmem [thread:$0]  %s388_s1, 1024, %s29_s27, [#allocation6], %s320_s22, %s320_s22, %s321_s23  }
  0x23   :  { %313 = dma.done.wait [#allocation3], 128  }
  0x24   :  { %314 = vsyncadd [#allocation3], 4294967168 }
  0x25   :  { %315 = dma.done.wait [#allocation6], 1024  }
  0x26   :  { %316 = vsyncadd [#allocation6], 4294966272  ;;  %v323_v0 = vmov 0.0   ;;  %vm324_vm0 = vmmov 0   ;;  %v234_v1 = vld [vmem:[#allocation5] sm:$0xff]   ;;  %v235_v2 = vld [vmem:[#allocation5 + $0x8] sm:$0xff]  }
  0x27   :  { %205 = vmatprep.subr.bf16.mxu0 %v323_v0  ;;  %221 = vmatprep.mubr.msk.bf16.mxu0 %vm324_vm0, %v323_v0  ;;  %v236_v3 = vld [vmem:[#allocation5 + $0x10] sm:$0xff]   ;;  %v237_v4 = vld [vmem:[#allocation5 + $0x18] sm:$0xff]   ;;  %v238_v5 = vld [vmem:[#allocation5 + $0x20] sm:$0xff]   ;;  %s325_s11 = smov [#allocation7]  }
  0x28   :  { %206 = vmatpush3.bf16.xpose.msra.mxu0 %v234_v1  ;;  %v239_v6 = vld [vmem:[#allocation5 + $0x28] sm:$0xff]   ;;  %v240_v7 = vld [vmem:[#allocation5 + $0x30] sm:$0xff]   ;;  %v241_v8 = vld [vmem:[#allocation5 + $0x38] sm:$0xff]   ;;  %s173_s12 = sshll.u32 %s325_s11, 4  ;;  %s174_s12 = int_to_ptr.vmem [resolvable:$true] %s173_s12 }
  0x29   :  { %207 = vmatprep.subr.bf16.mxu0 %v323_v0  ;;  %v242_v9 = vld [vmem:[#allocation2] sm:$0xff]   ;;  %s291_s13 = scalar_lea.vmem %s174_s12, 256  ;;  %p296_p3 = scmp.lt.s32.totalorder %s174_s12, %s174_s12 }
  0x2a   :  { %v186_v10 = vld [vmem:[%s389_s2] ss:$0 sm:$0xff]  ;;  %p292_p2 = scmp.ne.s32.totalorder %s174_s12, %s291_s13  ;;  %p297_p4 = scmp.lt.s32.totalorder %s291_s13, %s291_s13 }
  0x2c   :  { %p298_p5 = por %p297_p4, %p296_p3 }
  0x2e   :  { %p299_p6 = pnand %p298_p5, %p292_p2 }
  0x30   :  { %208 = vmatpush3.bf16.xpose.msra.mxu0 %v235_v2 }
  0x31   :  { %209 = vmatprep.subr.bf16.mxu0 %v323_v0 }
  0x38   :  { %210 = vmatpush3.bf16.xpose.msra.mxu0 %v236_v3 }
  0x39   :  { %211 = vmatprep.subr.bf16.mxu0 %v323_v0 }
  0x40   :  { %212 = vmatpush3.bf16.xpose.msra.mxu0 %v237_v4 }
  0x41   :  { %213 = vmatprep.subr.bf16.mxu0 %v323_v0 }
  0x48   :  { %214 = vmatpush3.bf16.xpose.msra.mxu0 %v238_v5 }
  0x49   :  { %215 = vmatprep.subr.bf16.mxu0 %v323_v0 }
  0x50   :  { %216 = vmatpush3.bf16.xpose.msra.mxu0 %v239_v6 }
  0x51   :  { %217 = vmatprep.subr.bf16.mxu0 %v323_v0 }
  0x58   :  { %218 = vmatpush3.bf16.xpose.msra.mxu0 %v240_v7 }
  0x59   :  { %219 = vmatprep.subr.bf16.mxu0 %v323_v0 }
  0x60   :  { %220 = vmatpush3.bf16.xpose.msra.mxu0 %v241_v8 }
  0x67   :  { %222 = vmatmul.mubr.bf16.vlgmr.msra.gmra.mrb[0].mxu0 %v242_v9 }
 0x13a   :  { %v157_v11 = vpop.f32.mrb[0].mxu0 }
 0x13b   :  { %v158_v12 = vadd.f32 %v186_v10, %v157_v11  ;;  %v223_v13 = vpop.f32.mrb[1].mxu0 }
 0x13c   :  { %v160_v14 = vpop.f32.mrb[2].mxu0 }
 0x13d   :  { %243 = vtanh.f32 %v158_v12  ;;  %v161_v15 = vadd.f32 %v186_v10, %v160_v14  ;;  %v224_v16 = vpop.f32.mrb[3].mxu0 }
 0x13f   :  { %245 = vtanh.f32 %v161_v15 }
 0x147   :  { %v244_v17 = vpop.eup %243 }
 0x148   :  { %166 = vst [vmem:[#allocation7] sm:$0xff] %v244_v17 }
 0x149   :  { %v246_v18 = vpop.eup %245 }
 0x14a   :  { %167 = vst [vmem:[#allocation7 + $0x8] sm:$0xff] %v246_v18 }
 0x14b   :  { %302 = shalt.err (!%p299_p6)
}
 0x14c   :  { %s303_s15 = scalar_lea.hbm %s390_s3, 256 }
 0x14d   :  { %p304_p7 = scmp.ne.s32.totalorder %s390_s3, %s303_s15  ;;  %p307_p8 = scmp.lt.u32.totalorder %s303_s15, %s390_s3 }
 0x14f   :  { %p309_p9 = pnand %p307_p8, %p304_p7 }
 0x151   :  { %312 = shalt.err (!%p309_p9)
}
 0x152   :  { %s326_s20 = smov 128   ;;  %s327_s21 = smov 8  }
 0x153   :  { %179 = dma.vmem_to_hbm [thread:$0]  %s174_s12, 256, %s390_s3, [#allocation4], %s326_s20, %s326_s20, %s327_s21  }
 0x154   :  { %317 = dma.done.wait [#allocation4], 256  }
 0x155   :  { %318 = vsyncadd [#allocation4], 4294967040 }
 0x156   :  { %183 = vsyncpa [#allocation3], 1 }
 0x157   :  { %184 = vsyncpa [#allocation6], 1 }
 0x158   :  { %185 = vsyncpa [#allocation4], 1 }

</bundles_post_ra>
